<compile_context>
chip_gen: v6e
topology: v6e:2x2x1
jax: 0.10.0
libtpu: 0.0.40
codegen_flags: <defaults>
</compile_context>

<pallas_src>
import functools

import jax
import jax.numpy as jnp
from jax.experimental import pallas as pl
from jax.experimental.pallas import tpu as pltpu

DIM = 3            # spatial coordinate dimension (3x3 Jacobians)
LANES = 128        # lane width
MIB = 1024 * 1024


def _cdiv(a, b):
    return -(-a // b)


def _round_up(a, b):
    return _cdiv(a, b) * b


def _chip_defaults():
    """Per-generation (tr_max, vmem_limit_bytes, mean_partial_slabs).

    Purely HBM-bound kernel: the only knob that matters is making each grid
    step big enough that the ~0.35 us fixed per-step cost is negligible,
    without blowing scoped VMEM. Falls back to a setting that is safe under
    every generation's *default* scoped-VMEM limit if hardware query fails.
    """
    tr_max, vmem_limit, ncores = 512, None, 2          # safe everywhere
    try:
        vmem = int(pltpu.get_tpu_info().vmem_capacity_bytes)
        if vmem <= 64 * MIB:
            # v7x-class: 64 MiB VMEM/TC, ~3.2 TB/s HBM, 2 TensorCores.
            #   TR=2048 -> 9 MiB input block, ~20 MiB double-buffered total.
            tr_max, vmem_limit, ncores = 2048, 28 * MIB, 2
        else:
            # v5e/v6e: 128 MiB physical VMEM, 1 TensorCore.
            #   TR=1024 -> 4.5 MiB input block, ~10 MiB total; raise the
            #   16/32 MiB scoped default explicitly so v5e has headroom.
            tr_max, vmem_limit, ncores = 1024, 28 * MIB, 1
    except Exception:
        pass
    return tr_max, vmem_limit, ncores


def _pick_tr(nb, tr_max, min_steps=2):
    """Sublane rows per block for a point-block count of `nb`.

    Prefer a multiple of 8 that yields at least `min_steps` grid steps (so
    v7x's two TensorCores both get work along the parallel axis). If the array
    is too small for that, use one full-extent block (block dim == array dim,
    which is always legal regardless of the (8,128) rule).
    """
    tr = min(tr_max, _round_up(_cdiv(nb, min_steps), 8))
    if 8 <= tr <= nb:
        return tr
    return nb


def _compiler_params(dims, vmem_limit):
    kw = dict(dimension_semantics=dims)
    if vmem_limit is not None:
        kw["vmem_limit_bytes"] = vmem_limit
    return pltpu.CompilerParams(**kw)


def _det_3x3(j, add_identity):
    """j: (9, TR, 128) component-major block. Returns det per point, (TR, 128)."""
    a00, a01, a02 = j[0], j[1], j[2]
    a10, a11, a12 = j[3], j[4], j[5]
    a20, a21, a22 = j[6], j[7], j[8]
    if add_identity:
        a00 = a00 + 1.0
        a11 = a11 + 1.0
        a22 = a22 + 1.0
    # NOTE: "1 - det" is kept in this (cancellation-prone near det==1) form to
    # match the PyTorch reference exactly.
    return (a00 * (a11 * a22 - a12 * a21)
            - a01 * (a10 * a22 - a12 * a20)
            + a02 * (a10 * a21 - a11 * a20))


def _elem_loss_kernel(jac_ref, out_ref, *, add_identity):
    # Dense (TR, 128) compute, lane-dense (TR, 128) store.
    out_ref[...] = jnp.abs(1.0 - _det_3x3(jac_ref[...], add_identity))


def _mean_partial_kernel(jac_ref, out_ref, *, add_identity, true_n,
                         steps_per_core, tr):
    c = pl.program_id(0)     # partial-slab / core index ("parallel")
    i = pl.program_id(1)     # step within this core ("arbitrary", innermost)

    @pl.when(i == 0)
    def _():
        out_ref[...] = jnp.zeros_like(out_ref)

    det = _det_3x3(jac_ref[...], add_identity)                 # (tr, 128)
    # Mask padded / boundary / duplicated-clamped points (global index >= N).
    # VALU is massively slack in this HBM-bound kernel, so the 2 iotas +
    # compare + select per step are effectively free.
    blk = c * steps_per_core + i                               # logical block
    base = blk * (tr * LANES)
    row = jax.lax.broadcasted_iota(jnp.int32, det.shape, 0)
    lane = jax.lax.broadcasted_iota(jnp.int32, det.shape, 1)
    idx = base + row * LANES + lane
    contrib = jnp.where(idx < true_n, jnp.abs(1.0 - det), 0.0)
    # Output block is resident across the arbitrary axis -> accumulator;
    # no per-step cross-lane reduce, no scalar read-modify-write.
    out_ref[...] += contrib[None]


def _jacobian_loss_cm(jac_cm_flat, *, true_n, add_identity, is_tensor):
    """jac_cm_flat: (9, N_arr) float32, component-major (row-major i*DIM+j).

    true_n <= N_arr is the number of real points (the tail may be padding from
    upstream coordinate padding)."""
    n_arr = jac_cm_flat.shape[1]
    n128 = _round_up(n_arr, LANES)
    if n128 != n_arr:
        # One full-array copy; avoided on the main coords path because the
        # coords are padded *before* jacfwd, so the Jacobian arrives aligned.
        jac_cm_flat = jnp.pad(jac_cm_flat, ((0, 0), (0, n128 - n_arr)))
    nb = n128 // LANES
    jac_r = jac_cm_flat.reshape(DIM * DIM, nb, LANES)     # zero-copy when aligned

    tr_max, vmem_limit, ncores = _chip_defaults()
    tr = _pick_tr(nb, tr_max)
    nblocks = _cdiv(nb, tr)

    if is_tensor:
        out = pl.pallas_call(
            functools.partial(_elem_loss_kernel, add_identity=add_identity),
            out_shape=jax.ShapeDtypeStruct((nb, LANES), jnp.float32),
            grid_spec=pltpu.PrefetchScalarGridSpec(
                num_scalar_prefetch=0,
                grid=(nblocks,),
                in_specs=[pl.BlockSpec((DIM * DIM, tr, LANES),
                                       lambda i: (0, i, 0))],
                out_specs=pl.BlockSpec((tr, LANES), lambda i: (i, 0)),
            ),
            compiler_params=_compiler_params(("parallel",), vmem_limit),
        )(jac_r)
        return out.reshape(nb * LANES)[:true_n]           # matches torch shape (N,)

    # Mean path: per-core partial slabs, tiny final reduce in the wrapper.
    ncores = max(1, min(ncores, nblocks))
    steps = _cdiv(nblocks, ncores)
    partials = pl.pallas_call(
        functools.partial(_mean_partial_kernel, add_identity=add_identity,
                          true_n=true_n, steps_per_core=steps, tr=tr),
        out_shape=jax.ShapeDtypeStruct((ncores, tr, LANES), jnp.float32),
        grid_spec=pltpu.PrefetchScalarGridSpec(
            num_scalar_prefetch=0,
            grid=(ncores, steps),
            in_specs=[pl.BlockSpec(
                (DIM * DIM, tr, LANES),
                # Clamp overhang iterations onto the last real block; their
                # contributions are zeroed by the in-kernel index mask.
                lambda c, i: (0, jnp.minimum(c * steps + i, nblocks - 1), 0))],
            out_specs=pl.BlockSpec((1, tr, LANES), lambda c, i: (c, 0, 0)),
        ),
        compiler_params=_compiler_params(("parallel", "arbitrary"), vmem_limit),
    )(jac_r)
    # Final sum over <= 2*tr*128 partials and the true-N scale: trivial XLA ops.
    return jnp.sum(partials) / true_n


def jacobian_loss_from_jacobian_cm(jac_cm, *, add_identity=True, is_tensor=False):
    """jac_cm: (DIM, DIM, N) component-major Jacobian (near-zero-copy path)."""
    assert jac_cm.shape[:2] == (DIM, DIM)
    n = jac_cm.shape[-1]
    return _jacobian_loss_cm(
        jac_cm.reshape(DIM * DIM, n).astype(jnp.float32),
        true_n=n, add_identity=add_identity, is_tensor=is_tensor)


def jacobian_loss_from_jacobian(jac, *, add_identity=True, is_tensor=False):
    """jac: (N, DIM, DIM) torch-layout Jacobian. NOTE: this compatibility entry
    needs one HBM relayout pass (transpose); prefer the component-major entry
    or jacobian_loss_coords for the fast path."""
    n = jac.shape[0]
    assert jac.shape == (n, DIM, DIM)
    jac_cm_flat = jnp.transpose(jac.reshape(n, DIM * DIM), (1, 0)).astype(jnp.float32)
    return _jacobian_loss_cm(jac_cm_flat, true_n=n, add_identity=add_identity,
                             is_tensor=is_tensor)


def jacobian_loss_coords(point_fn, input_coords, *, add_identity=True,
                         is_tensor=False):
    """Full forward: autodiff Jacobian + Pallas det/abs/reduce kernel."""
    # TODO(synk): torch.autograd.grad has no in-kernel Pallas equivalent; the
    # per-point Jacobian is computed with jax.jacfwd. out_axes=-1 makes the
    # result component-major (DIM, DIM, N_pad) so the kernel layout is a pure
    # reshape. Padding the *coords* (12 B/point) here instead of the Jacobian
    # (36 B/point) later removes a full-array HBM copy from the hot path.
    n = input_coords.shape[0]
    n_pad = _round_up(max(n, 1), LANES)
    if n_pad != n:
        input_coords = jnp.pad(input_coords, ((0, n_pad - n), (0, 0)))
    jac_cm = jax.vmap(jax.jacfwd(point_fn), out_axes=-1)(input_coords)
    return _jacobian_loss_cm(
        jac_cm.reshape(DIM * DIM, n_pad).astype(jnp.float32),
        true_n=n, add_identity=add_identity, is_tensor=is_tensor)


if __name__ == "__main__":
    key = jax.random.PRNGKey(0)
    N, H = 200, 32     # N deliberately NOT a multiple of 128: exercises pad+mask

    k1, k2, k3, k4 = jax.random.split(key, 4)
    # Deterministic synthetic "network" mapping coords -> coords (displacement).
    W1 = jax.random.normal(k1, (DIM, H), jnp.float32) * 0.3
    b1 = jax.random.normal(k2, (H,), jnp.float32) * 0.1
    W2 = jax.random.normal(k3, (H, DIM), jnp.float32) * 0.3

    def point_fn(x):                       # x: (DIM,) -> (DIM,)
        return 0.1 * jnp.tanh(x @ W1 + b1) @ W2

    input_coords = jax.random.normal(k4, (N, DIM), jnp.float32)

    # Default module config: add_identity=True, is_tensor=False (scalar mean).
    loss = jacobian_loss_coords(point_fn, input_coords,
                                add_identity=True, is_tensor=False)
    loss = jax.block_until_ready(loss)

    # Elementwise (is_tensor=True) path.
    loss_vec = jacobian_loss_coords(point_fn, input_coords,
                                    add_identity=True, is_tensor=True)
    loss_vec = jax.block_until_ready(loss_vec)

    # Correctness check against a pure-JAX reference.
    jac_ref = jax.vmap(jax.jacfwd(point_fn))(input_coords)        # (N, 3, 3)
    jac_id = jac_ref + jnp.eye(DIM, dtype=jnp.float32)[None]
    ref_vec = jnp.abs(1.0 - jnp.linalg.det(jac_id))
    assert loss_vec.shape == (N,)
    assert jnp.allclose(loss_vec, ref_vec, atol=1e-5)
    assert jnp.allclose(loss, jnp.mean(ref_vec), atol=1e-5)

    # Also exercise the (N, DIM, DIM) torch-layout entry and add_identity=False.
    loss2 = jax.block_until_ready(
        jacobian_loss_from_jacobian(jac_ref, add_identity=False, is_tensor=True))
    ref2 = jnp.abs(1.0 - jnp.linalg.det(jac_ref))
    assert jnp.allclose(loss2, ref2, atol=1e-5)
    loss3 = jax.block_until_ready(
        jacobian_loss_from_jacobian(jac_ref, add_identity=False, is_tensor=False))
    assert jnp.allclose(loss3, jnp.mean(ref2), atol=1e-5)

    # Component-major entry.
    jac_cm = jnp.transpose(jac_ref, (1, 2, 0))                    # (3, 3, N)
    loss4 = jax.block_until_ready(
        jacobian_loss_from_jacobian_cm(jac_cm, add_identity=True, is_tensor=False))
    assert jnp.allclose(loss4, jnp.mean(ref_vec), atol=1e-5)

    print("KERNEL_OK")
</pallas_src>

<mosaic_0001>
module attributes {stable_mosaic.version = 11 : i64} {
  func.func @_mean_partial_kernel(%arg0: i32, %arg1: i32, %arg2: memref<9x2x128xf32, #tpu.memory_space<vmem>>, %arg3: memref<1x2x128xf32, #tpu.memory_space<vmem>>) attributes {dimension_semantics = [#tpu.dimension_semantics<parallel>, #tpu.dimension_semantics<arbitrary>], iteration_bounds = array<i64: 1, 1>, scalar_prefetch = 0 : i64, scratch_operands = 0 : i64, tpu.core_type = #tpu.core_type<tc>, window_params = [{transform_indices = @transform_0, window_bounds = array<i64: 9, 2, 128>}, {transform_indices = @transform_1, window_bounds = array<i64: 1, 2, 128>}]} {
    %c0_i32 = arith.constant 0 : i32
    %0 = arith.cmpi eq, %arg1, %c0_i32 : i32
    %1 = arith.extui %0 : i1 to i32
    %c0_i32_0 = arith.constant 0 : i32
    %2 = arith.cmpi ne, %1, %c0_i32_0 : i32
    scf.if %2 {
      %cst_13 = arith.constant 0.000000e+00 : f32
      %63 = vector.broadcast %cst_13 : f32 to vector<1x2x128xf32>
      %c0_14 = arith.constant 0 : index
      %c0_15 = arith.constant 0 : index
      %c0_16 = arith.constant 0 : index
      %64 = vector.load %arg3[%c0_14, %c0_15, %c0_16] : memref<1x2x128xf32, #tpu.memory_space<vmem>>, vector<1x2x128xf32>
      tpu.vector_store %arg3[%c0_14, %c0_15, %c0_16], %63 {strides = array<i32>} : memref<1x2x128xf32, #tpu.memory_space<vmem>>, vector<1x2x128xf32>,
    } else {
    }
    %c0 = arith.constant 0 : index
    %c0_1 = arith.constant 0 : index
    %c0_2 = arith.constant 0 : index
    %3 = vector.load %arg2[%c0, %c0_1, %c0_2] : memref<9x2x128xf32, #tpu.memory_space<vmem>>, vector<9x2x128xf32>
    %4 = vector.extract_strided_slice %3 {offsets = [0, 0, 0], sizes = [1, 2, 128], strides = [1, 1, 1]} : vector<9x2x128xf32> to vector<1x2x128xf32>
    %5 = vector.shape_cast %4 : vector<1x2x128xf32> to vector<2x128xf32>
    %6 = vector.extract_strided_slice %3 {offsets = [1, 0, 0], sizes = [1, 2, 128], strides = [1, 1, 1]} : vector<9x2x128xf32> to vector<1x2x128xf32>
    %7 = vector.shape_cast %6 : vector<1x2x128xf32> to vector<2x128xf32>
    %8 = vector.extract_strided_slice %3 {offsets = [2, 0, 0], sizes = [1, 2, 128], strides = [1, 1, 1]} : vector<9x2x128xf32> to vector<1x2x128xf32>
    %9 = vector.shape_cast %8 : vector<1x2x128xf32> to vector<2x128xf32>
    %10 = vector.extract_strided_slice %3 {offsets = [3, 0, 0], sizes = [1, 2, 128], strides = [1, 1, 1]} : vector<9x2x128xf32> to vector<1x2x128xf32>
    %11 = vector.shape_cast %10 : vector<1x2x128xf32> to vector<2x128xf32>
    %12 = vector.extract_strided_slice %3 {offsets = [4, 0, 0], sizes = [1, 2, 128], strides = [1, 1, 1]} : vector<9x2x128xf32> to vector<1x2x128xf32>
    %13 = vector.shape_cast %12 : vector<1x2x128xf32> to vector<2x128xf32>
    %14 = vector.extract_strided_slice %3 {offsets = [5, 0, 0], sizes = [1, 2, 128], strides = [1, 1, 1]} : vector<9x2x128xf32> to vector<1x2x128xf32>
    %15 = vector.shape_cast %14 : vector<1x2x128xf32> to vector<2x128xf32>
    %16 = vector.extract_strided_slice %3 {offsets = [6, 0, 0], sizes = [1, 2, 128], strides = [1, 1, 1]} : vector<9x2x128xf32> to vector<1x2x128xf32>
    %17 = vector.shape_cast %16 : vector<1x2x128xf32> to vector<2x128xf32>
    %18 = vector.extract_strided_slice %3 {offsets = [7, 0, 0], sizes = [1, 2, 128], strides = [1, 1, 1]} : vector<9x2x128xf32> to vector<1x2x128xf32>
    %19 = vector.shape_cast %18 : vector<1x2x128xf32> to vector<2x128xf32>
    %20 = vector.extract_strided_slice %3 {offsets = [8, 0, 0], sizes = [1, 2, 128], strides = [1, 1, 1]} : vector<9x2x128xf32> to vector<1x2x128xf32>
    %21 = vector.shape_cast %20 : vector<1x2x128xf32> to vector<2x128xf32>
    %cst = arith.constant 1.000000e+00 : f32
    %22 = vector.broadcast %cst : f32 to vector<2x128xf32>
    %23 = arith.addf %5, %22 : vector<2x128xf32>
    %cst_3 = arith.constant 1.000000e+00 : f32
    %24 = vector.broadcast %cst_3 : f32 to vector<2x128xf32>
    %25 = arith.addf %13, %24 : vector<2x128xf32>
    %cst_4 = arith.constant 1.000000e+00 : f32
    %26 = vector.broadcast %cst_4 : f32 to vector<2x128xf32>
    %27 = arith.addf %21, %26 : vector<2x128xf32>
    %28 = arith.mulf %25, %27 : vector<2x128xf32>
    %29 = arith.mulf %15, %19 : vector<2x128xf32>
    %30 = arith.subf %28, %29 : vector<2x128xf32>
    %31 = arith.mulf %23, %30 : vector<2x128xf32>
    %32 = arith.mulf %11, %27 : vector<2x128xf32>
    %33 = arith.mulf %15, %17 : vector<2x128xf32>
    %34 = arith.subf %32, %33 : vector<2x128xf32>
    %35 = arith.mulf %7, %34 : vector<2x128xf32>
    %36 = arith.subf %31, %35 : vector<2x128xf32>
    %37 = arith.mulf %11, %19 : vector<2x128xf32>
    %38 = arith.mulf %25, %17 : vector<2x128xf32>
    %39 = arith.subf %37, %38 : vector<2x128xf32>
    %40 = arith.mulf %9, %39 : vector<2x128xf32>
    %41 = arith.addf %36, %40 : vector<2x128xf32>
    %c1_i32 = arith.constant 1 : i32
    %42 = arith.muli %arg0, %c1_i32 : i32
    %43 = arith.addi %42, %arg1 : i32
    %c256_i32 = arith.constant 256 : i32
    %44 = arith.muli %43, %c256_i32 : i32
    %45 = tpu.iota {dimensions = array<i32: 0>} : vector<2x128xi32>
    %46 = tpu.iota {dimensions = array<i32: 1>} : vector<2x128xi32>
    %c128_i32 = arith.constant 128 : i32
    %47 = vector.broadcast %c128_i32 : i32 to vector<2x128xi32>
    %48 = arith.muli %45, %47 : vector<2x128xi32>
    %49 = vector.broadcast %44 : i32 to vector<2x128xi32>
    %50 = arith.addi %49, %48 : vector<2x128xi32>
    %51 = arith.addi %50, %46 : vector<2x128xi32>
    %c200_i32 = arith.constant 200 : i32
    %52 = vector.broadcast %c200_i32 : i32 to vector<2x128xi32>
    %53 = arith.cmpi slt, %51, %52 : vector<2x128xi32>
    %cst_5 = arith.constant 1.000000e+00 : f32
    %54 = vector.broadcast %cst_5 : f32 to vector<2x128xf32>
    %55 = arith.subf %54, %41 : vector<2x128xf32>
    %56 = math.absf %55 : vector<2x128xf32>
    %cst_6 = arith.constant 0.000000e+00 : f32
    %57 = vector.broadcast %cst_6 : f32 to vector<2x128xf32>
    %58 = arith.select %53, %56, %57 : vector<2x128xi1>, vector<2x128xf32>
    %c0_7 = arith.constant 0 : index
    %c0_8 = arith.constant 0 : index
    %c0_9 = arith.constant 0 : index
    %59 = vector.load %arg3[%c0_7, %c0_8, %c0_9] : memref<1x2x128xf32, #tpu.memory_space<vmem>>, vector<1x2x128xf32>
    %60 = vector.shape_cast %58 : vector<2x128xf32> to vector<1x2x128xf32>
    %61 = arith.addf %59, %60 : vector<1x2x128xf32>
    %c0_10 = arith.constant 0 : index
    %c0_11 = arith.constant 0 : index
    %c0_12 = arith.constant 0 : index
    %62 = vector.load %arg3[%c0_10, %c0_11, %c0_12] : memref<1x2x128xf32, #tpu.memory_space<vmem>>, vector<1x2x128xf32>
    tpu.vector_store %arg3[%c0_10, %c0_11, %c0_12], %61 {strides = array<i32>} : memref<1x2x128xf32, #tpu.memory_space<vmem>>, vector<1x2x128xf32>,
    return
  }
  func.func @transform_0(%arg0: i32, %arg1: i32) -> (i32, i32, i32) {
    %c1_i32 = arith.constant 1 : i32
    %0 = arith.muli %arg0, %c1_i32 : i32
    %1 = arith.addi %0, %arg1 : i32
    %c0_i32 = arith.constant 0 : i32
    %2 = arith.minsi %1, %c0_i32 : i32
    %c0_i32_0 = arith.constant 0 : i32
    %c0_i32_1 = arith.constant 0 : i32
    %c0_i32_2 = arith.constant 0 : i32
    return %c0_i32_0, %2, %c0_i32_1 : i32, i32, i32
  }
  func.func @transform_1(%arg0: i32, %arg1: i32) -> (i32, i32, i32) {
    %c0_i32 = arith.constant 0 : i32
    %c0_i32_0 = arith.constant 0 : i32
    %c0_i32_1 = arith.constant 0 : i32
    return %arg0, %c0_i32, %c0_i32_0 : i32, i32, i32
  }
}

</mosaic_0001>

<bundles_post_ra>
// kernel: tpu_custom_call.1
= control target key start
LH: loop header
LB: loop body
LE: loop exit
PB: predicated region body
PF: predicated region fallthrough
CT: control target
= control target key end

     0   :  { %6 = vsyncpa [#allocation3], 0  ;;  %s166_s0 = inlined_call_operand.hbm [shape: f32[9,2,128], index: 0, kind: input, shape index: {}]   ;;  %s167_s1 = inlined_call_operand.hbm [shape: f32[1,2,128], index: 1, kind: output, shape index: {}]  }
   0x1   :  { %7 = vsyncpa [#allocation4], 0  ;;  %s145_s6 = smov [#allocation2]  }
   0x2   :  { %s18_s7 = sshll.u32 %s145_s6, 4  ;;  %s19_s7 = int_to_ptr.vmem [resolvable:$true] %s18_s7 }
   0x3   :  { %s109_s8 = scalar_lea.vmem %s19_s7, 288  ;;  %p114_p1 = scmp.lt.s32.totalorder %s19_s7, %s19_s7 }
   0x4   :  { %p110_p0 = scmp.ne.s32.totalorder %s19_s7, %s109_s8  ;;  %p115_p2 = scmp.lt.s32.totalorder %s109_s8, %s109_s8 }
   0x6   :  { %p116_p3 = por %p115_p2, %p114_p1 }
   0x8   :  { %p117_p4 = pnand %p116_p3, %p110_p0 }
   0xa   :  { %120 = shalt.err (!%p117_p4)
}
   0xb   :  { %s146_s9 = smov 32   ;;  %s147_s10 = smov 2  }
   0xc   :  { %24 = dma.hbm_to_vmem [thread:$0]  %s166_s0, 288, %s19_s7, [#allocation3], %s146_s9, %s146_s9, %s147_s10  }
   0xd   :  { %141 = dma.done.wait [#allocation3], 288  }
   0xe   :  { %142 = vsyncadd [#allocation3], 4294967008  ;;  %v148_v0 = vmov 0.0   ;;  %v36_v1 = vld [vmem:[#allocation2] sm:$0x3]  ;;  %v64_v2 = vlaneseq  ;;  %s149_s0 = smov [#allocation5]  }
   0xf   :  { %35 = vst [vmem:[#allocation5] sm:$0x3] %v148_v0  ;;  %v39_v3 = vld [vmem:[#allocation2 + $0x6] sm:$0x3]  ;;  %v40_v4 = vld [vmem:[#allocation2 + $0x8] sm:$0x3] }
  0x10   :  { %v41_v5 = vld [vmem:[#allocation2 + $0xa] sm:$0x3]  ;;  %v42_v6 = vld [vmem:[#allocation2 + $0xc] sm:$0x3]  ;;  %v43_v7 = vld [vmem:[#allocation2 + $0xe] sm:$0x3] }
  0x11   :  { %v44_v8 = vld [vmem:[#allocation2 + $0x10] sm:$0x3]  ;;  %v46_v9 = vadd.f32 1.0, %v40_v4  ;;  %v49_v11 = vmul.f32 %v43_v7, %v41_v5  ;;  %v53_v12 = vmul.f32 %v42_v6, %v41_v5  ;;  %v57_v13 = vmul.f32 %v43_v7, %v39_v3  ;;  %v37_v19 = vld [vmem:[#allocation2 + $0x2] sm:$0x3]  ;;  %s85_s13 = sshll.u32 %s149_s0, 4  ;;  %s86_s13 = int_to_ptr.vmem [resolvable:$true] %s85_s13 }
  0x12   :  { %v47_v10 = vadd.f32 1.0, %v44_v8  ;;  %v65_v14 = vshrl.u32 %v64_v2, 7  ;;  %v45_v15 = vadd.f32 1.0, %v36_v1  ;;  %v38_v20 = vld [vmem:[#allocation2 + $0x4] sm:$0x3]  ;;  %v67_v24 = vand.u32 127, %v64_v2  ;;  %p126_p6 = scmp.lt.s32.totalorder %s86_s13, %s86_s13 }
  0x13   :  { %v58_v18 = vmul.f32 %v46_v9, %v42_v6  ;;  %s121_s14 = scalar_lea.vmem %s86_s13, 32 }
  0x14   :  { %v48_v16 = vmul.f32 %v47_v10, %v46_v9  ;;  %v52_v17 = vmul.f32 %v47_v10, %v39_v3  ;;  %v68_v25 = vmul.u32 128, %v65_v14  ;;  %p122_p5 = scmp.ne.s32.totalorder %s86_s13, %s121_s14  ;;  %p127_p7 = scmp.lt.s32.totalorder %s121_s14, %s121_s14 }
  0x15   :  { %v59_v23 = vsub.f32 %v57_v13, %v58_v18 }
  0x16   :  { %v50_v21 = vsub.f32 %v48_v16, %v49_v11  ;;  %v54_v22 = vsub.f32 %v52_v17, %v53_v12  ;;  %v71_v30 = vadd.s32 %v68_v25, %v67_v24  ;;  %v76_v34 = vld [vmem:[#allocation5] sm:$0x3]  ;;  %p128_p8 = por %p127_p7, %p126_p6 }
  0x17   :  { %v60_v28 = vmul.f32 %v59_v23, %v38_v20 }
  0x18   :  { %v51_v26 = vmul.f32 %v50_v21, %v45_v15  ;;  %v55_v27 = vmul.f32 %v54_v22, %v37_v19  ;;  %vm72_vm0 = vcmp.lt.s32.totalorder %v71_v30, 200  ;;  %p129_p9 = pnand %p128_p8, %p122_p5 }
  0x1a   :  { %v56_v29 = vsub.f32 %v51_v26, %v55_v27 }
  0x1c   :  { %v61_v31 = vadd.f32 %v60_v28, %v56_v29 }
  0x1e   :  { %v73_v32 = vsub.f32 1.0, %v61_v31 }
  0x20   :  { %v74_v33 = vand.u32 2147483647, %v73_v32 }
  0x22   :  { %v75_v35 = vsel %vm72_vm0, %v74_v33, 0.0 }
  0x23   :  { %v77_v36 = vadd.f32 %v76_v34, %v75_v35 }
  0x25   :  { %78 = vst [vmem:[#allocation5] sm:$0x3] %v77_v36 }
  0x26   :  { %132 = shalt.err (!%p129_p9)
}
  0x27   :  { %88 = dma.vmem_to_hbm [thread:$0]  %s86_s13, 32, %s167_s1, [#allocation4]  }
  0x28   :  { %143 = dma.done.wait [#allocation4], 32  }
  0x29   :  { %144 = vsyncadd [#allocation4], 4294967264 }
  0x2a   :  { %92 = vsyncpa [#allocation3], 1 }
  0x2b   :  { %93 = vsyncpa [#allocation4], 1 }

</bundles_post_ra>
